<compile_context>
chip_gen: v7x
topology: tpu7x:2x2x1
jax: 0.10.0
libtpu: 0.0.40
codegen_flags: <defaults>
</compile_context>

<pallas_src>
import jax
import jax.numpy as jnp
from jax.experimental import pallas as pl
from jax.experimental.pallas import tpu as pltpu


def _policy_mean_kernel(
    x_ref,      # (TILE_B, D_in)   f32
    w1_ref,     # (D_in, H1)       bf16 (VMEM-resident across grid steps)
    b1_ref,     # (1, H1)          f32
    w2_ref,     # (H1, H2)         bf16
    b2_ref,     # (1, H2)          f32
    wm_ref,     # (H2, A)          bf16
    bm_ref,     # (1, A)           f32
    mean_ref,   # out: (TILE_B, A) f32
):
    x = x_ref[...]
    # Backbone MLP: two MXU matmuls (bf16 operands, f32 accumulation) + f32 tanh.
    h1 = jnp.tanh(
        jnp.dot(x.astype(w1_ref.dtype), w1_ref[...],
                preferred_element_type=jnp.float32) + b1_ref[...])
    h2 = jnp.tanh(
        jnp.dot(h1.astype(w2_ref.dtype), w2_ref[...],
                preferred_element_type=jnp.float32) + b2_ref[...])
    # action_mean head.
    mean = jnp.dot(h2.astype(wm_ref.dtype), wm_ref[...],
                   preferred_element_type=jnp.float32) + bm_ref[...]
    mean_ref[...] = mean.astype(mean_ref.dtype)


def policy_forward(x, params, *, max_tile_b=512):
    """Returns (action_mean, action_std): the DiagGaussian parameters."""
    B, D_in = x.shape
    H1 = params["w1"].shape[1]
    H2 = params["w2"].shape[1]
    A = params["wm"].shape[1]

    # Batch tile: multiple of 8 (sublane), capped at max_tile_b for pipelining.
    tb = min(max_tile_b, max(8, ((B + 7) // 8) * 8))
    grid = (pl.cdiv(B, tb),)
    b_pad = grid[0] * tb
    if b_pad != B:
        x = jnp.pad(x, ((0, b_pad - B), (0, 0)))

    flops = 2 * b_pad * (D_in * H1 + H1 * H2 + H2 * A)
    transcendentals = b_pad * (H1 + H2)  # tanh
    bytes_accessed = (
        x.size * x.dtype.itemsize
        + sum(params[k].size * params[k].dtype.itemsize
              for k in ("w1", "b1", "w2", "b2", "wm", "bm"))
        + b_pad * A * 4)

    def const(shape):
        return pl.BlockSpec(shape, lambda i: (0, 0))

    mean = pl.pallas_call(
        _policy_mean_kernel,
        out_shape=jax.ShapeDtypeStruct((b_pad, A), jnp.float32),
        grid=grid,
        in_specs=[
            pl.BlockSpec((tb, D_in), lambda i: (i, 0)),   # x: tiled over batch
            const((D_in, H1)), const((1, H1)),            # weights stay resident
            const((H1, H2)), const((1, H2)),
            const((H2, A)), const((1, A)),
        ],
        out_specs=pl.BlockSpec((tb, A), lambda i: (i, 0)),
        compiler_params=pltpu.CompilerParams(
            dimension_semantics=("parallel",)),
        cost_estimate=pl.CostEstimate(
            flops=flops,
            transcendentals=transcendentals,
            bytes_accessed=bytes_accessed),
    )(x, params["w1"], params["b1"], params["w2"], params["b2"],
      params["wm"], params["bm"])
    mean = mean[:B]

    # action_std is state-independent: exp on the (1, A) row, broadcast in JAX.
    std = jnp.broadcast_to(jnp.exp(params["log_std"]), mean.shape)
    return mean, std


def init_params(key, state_dim, hidden1, hidden2, action_dim, log_std=0.0,
                weight_dtype=jnp.bfloat16):
    """Deterministic synthetic init mirroring the PyTorch Gaussian policy."""
    k1, k2, k3 = jax.random.split(key, 3)
    # Backbone MLP weights, stored pre-transposed to (in, out) and in bf16.
    w1 = (jax.random.normal(k1, (state_dim, hidden1), jnp.float32) * 0.1
          ).astype(weight_dtype)
    b1 = jnp.zeros((1, hidden1), jnp.float32)
    w2 = (jax.random.normal(k2, (hidden1, hidden2), jnp.float32) * 0.1
          ).astype(weight_dtype)
    b2 = jnp.zeros((1, hidden2), jnp.float32)
    # action_mean head: weight scaled by 0.1, bias zeroed (as in __init__).
    wm = (jax.random.normal(k3, (hidden2, action_dim), jnp.float32) * 0.1
          ).astype(weight_dtype)
    bm = jnp.zeros((1, action_dim), jnp.float32)
    # action_log_std = ones(1, action_dim) * log_std
    logstd = jnp.ones((1, action_dim), jnp.float32) * log_std
    return {"w1": w1, "b1": b1, "w2": w2, "b2": b2,
            "wm": wm, "bm": bm, "log_std": logstd}


def _ref_forward(x, params):
    """Pure-JAX reference with the same bf16 operand / f32 accumulation math."""
    h1 = jnp.tanh(jnp.dot(x.astype(params["w1"].dtype), params["w1"],
                          preferred_element_type=jnp.float32) + params["b1"])
    h2 = jnp.tanh(jnp.dot(h1.astype(params["w2"].dtype), params["w2"],
                          preferred_element_type=jnp.float32) + params["b2"])
    mean = jnp.dot(h2.astype(params["wm"].dtype), params["wm"],
                   preferred_element_type=jnp.float32) + params["bm"]
    std = jnp.broadcast_to(jnp.exp(params["log_std"]), mean.shape)
    return mean, std


if __name__ == "__main__":
    key = jax.random.PRNGKey(0)
    B, STATE_DIM, H1, H2, ACTION_DIM = 8, 32, 64, 64, 8

    kx, kp = jax.random.split(key)
    x = jax.random.normal(kx, (B, STATE_DIM), jnp.float32)
    params = init_params(kp, STATE_DIM, H1, H2, ACTION_DIM, log_std=0.0)

    mean, std = policy_forward(x, params)
    jax.block_until_ready((mean, std))

    ref_mean, ref_std = _ref_forward(x, params)
    assert mean.shape == (B, ACTION_DIM) and std.shape == (B, ACTION_DIM)
    assert jnp.allclose(mean, ref_mean, atol=1e-2, rtol=1e-2), "mean mismatch"
    assert jnp.allclose(std, ref_std, atol=1e-5, rtol=1e-5), "std mismatch"

    print("KERNEL_OK")
</pallas_src>

<mosaic_0001>
module attributes {stable_mosaic.version = 11 : i64} {
  func.func @_policy_mean_kernel(%arg0: i32, %arg1: memref<8x32xf32, #tpu.memory_space<vmem>>, %arg2: memref<32x64xbf16, #tpu.memory_space<vmem>>, %arg3: memref<1x64xf32, #tpu.memory_space<vmem>>, %arg4: memref<64x64xbf16, #tpu.memory_space<vmem>>, %arg5: memref<1x64xf32, #tpu.memory_space<vmem>>, %arg6: memref<64x8xbf16, #tpu.memory_space<vmem>>, %arg7: memref<1x8xf32, #tpu.memory_space<vmem>>, %arg8: memref<8x8xf32, #tpu.memory_space<vmem>>) attributes {dimension_semantics = [#tpu.dimension_semantics<parallel>], iteration_bounds = array<i64: 1>, scalar_prefetch = 0 : i64, scratch_operands = 0 : i64, tpu.core_type = #tpu.core_type<tc>, window_params = [{transform_indices = @transform_0, window_bounds = array<i64: 8, 32>}, {pipeline_mode = #tpu.pipeline_mode<synchronous>, transform_indices = @transform_1, window_bounds = array<i64: 32, 64>}, {pipeline_mode = #tpu.pipeline_mode<synchronous>, transform_indices = @transform_2, window_bounds = array<i64: 1, 64>}, {pipeline_mode = #tpu.pipeline_mode<synchronous>, transform_indices = @transform_3, window_bounds = array<i64: 64, 64>}, {pipeline_mode = #tpu.pipeline_mode<synchronous>, transform_indices = @transform_4, window_bounds = array<i64: 1, 64>}, {pipeline_mode = #tpu.pipeline_mode<synchronous>, transform_indices = @transform_5, window_bounds = array<i64: 64, 8>}, {pipeline_mode = #tpu.pipeline_mode<synchronous>, transform_indices = @transform_6, window_bounds = array<i64: 1, 8>}, {transform_indices = @transform_7, window_bounds = array<i64: 8, 8>}]} {
    %c0 = arith.constant 0 : index
    %c0_0 = arith.constant 0 : index
    %0 = vector.load %arg1[%c0, %c0_0] : memref<8x32xf32, #tpu.memory_space<vmem>>, vector<8x32xf32>
    %1 = arith.truncf %0 : vector<8x32xf32> to vector<8x32xbf16>
    %c0_1 = arith.constant 0 : index
    %c0_2 = arith.constant 0 : index
    %2 = vector.load %arg2[%c0_1, %c0_2] : memref<32x64xbf16, #tpu.memory_space<vmem>>, vector<32x64xbf16>
    %cst = arith.constant dense<0.000000e+00> : vector<8x64xf32>
    %3 = tpu.matmul %1, %2, %cst {dimension_numbers = #tpu.dot_dimension_numbers<[1], [0], [0], [1], [0, 0, 1, 1], [], []>} : vector<8x32xbf16>, vector<32x64xbf16>, vector<8x64xf32> -> vector<8x64xf32>
    %c0_3 = arith.constant 0 : index
    %c0_4 = arith.constant 0 : index
    %4 = vector.load %arg3[%c0_3, %c0_4] : memref<1x64xf32, #tpu.memory_space<vmem>>, vector<1x64xf32>
    %5 = vector.broadcast %4 : vector<1x64xf32> to vector<8x64xf32>
    %6 = arith.addf %3, %5 : vector<8x64xf32>
    %7 = math.tanh %6 : vector<8x64xf32>
    %8 = arith.truncf %7 : vector<8x64xf32> to vector<8x64xbf16>
    %c0_5 = arith.constant 0 : index
    %c0_6 = arith.constant 0 : index
    %9 = vector.load %arg4[%c0_5, %c0_6] : memref<64x64xbf16, #tpu.memory_space<vmem>>, vector<64x64xbf16>
    %cst_7 = arith.constant dense<0.000000e+00> : vector<8x64xf32>
    %10 = tpu.matmul %8, %9, %cst_7 {dimension_numbers = #tpu.dot_dimension_numbers<[1], [0], [0], [1], [0, 0, 1, 1], [], []>} : vector<8x64xbf16>, vector<64x64xbf16>, vector<8x64xf32> -> vector<8x64xf32>
    %c0_8 = arith.constant 0 : index
    %c0_9 = arith.constant 0 : index
    %11 = vector.load %arg5[%c0_8, %c0_9] : memref<1x64xf32, #tpu.memory_space<vmem>>, vector<1x64xf32>
    %12 = vector.broadcast %11 : vector<1x64xf32> to vector<8x64xf32>
    %13 = arith.addf %10, %12 : vector<8x64xf32>
    %14 = math.tanh %13 : vector<8x64xf32>
    %15 = arith.truncf %14 : vector<8x64xf32> to vector<8x64xbf16>
    %c0_10 = arith.constant 0 : index
    %c0_11 = arith.constant 0 : index
    %16 = vector.load %arg6[%c0_10, %c0_11] : memref<64x8xbf16, #tpu.memory_space<vmem>>, vector<64x8xbf16>
    %cst_12 = arith.constant dense<0.000000e+00> : vector<8x8xf32>
    %17 = tpu.matmul %15, %16, %cst_12 {dimension_numbers = #tpu.dot_dimension_numbers<[1], [0], [0], [1], [0, 0, 1, 1], [], []>} : vector<8x64xbf16>, vector<64x8xbf16>, vector<8x8xf32> -> vector<8x8xf32>
    %c0_13 = arith.constant 0 : index
    %c0_14 = arith.constant 0 : index
    %18 = vector.load %arg7[%c0_13, %c0_14] : memref<1x8xf32, #tpu.memory_space<vmem>>, vector<1x8xf32>
    %19 = vector.broadcast %18 : vector<1x8xf32> to vector<8x8xf32>
    %20 = arith.addf %17, %19 : vector<8x8xf32>
    %c0_15 = arith.constant 0 : index
    %c0_16 = arith.constant 0 : index
    %21 = vector.load %arg8[%c0_15, %c0_16] : memref<8x8xf32, #tpu.memory_space<vmem>>, vector<8x8xf32>
    tpu.vector_store %arg8[%c0_15, %c0_16], %20 {strides = array<i32>} : memref<8x8xf32, #tpu.memory_space<vmem>>, vector<8x8xf32>,
    return
  }
  func.func @transform_0(%arg0: i32) -> (i32, i32) {
    %c0_i32 = arith.constant 0 : i32
    %c0_i32_0 = arith.constant 0 : i32
    return %arg0, %c0_i32 : i32, i32
  }
  func.func @transform_1(%arg0: i32) -> (i32, i32) {
    %c0_i32 = arith.constant 0 : i32
    %c0_i32_0 = arith.constant 0 : i32
    %c0_i32_1 = arith.constant 0 : i32
    return %c0_i32, %c0_i32_0 : i32, i32
  }
  func.func @transform_2(%arg0: i32) -> (i32, i32) {
    %c0_i32 = arith.constant 0 : i32
    %c0_i32_0 = arith.constant 0 : i32
    %c0_i32_1 = arith.constant 0 : i32
    return %c0_i32, %c0_i32_0 : i32, i32
  }
  func.func @transform_3(%arg0: i32) -> (i32, i32) {
    %c0_i32 = arith.constant 0 : i32
    %c0_i32_0 = arith.constant 0 : i32
    %c0_i32_1 = arith.constant 0 : i32
    return %c0_i32, %c0_i32_0 : i32, i32
  }
  func.func @transform_4(%arg0: i32) -> (i32, i32) {
    %c0_i32 = arith.constant 0 : i32
    %c0_i32_0 = arith.constant 0 : i32
    %c0_i32_1 = arith.constant 0 : i32
    return %c0_i32, %c0_i32_0 : i32, i32
  }
  func.func @transform_5(%arg0: i32) -> (i32, i32) {
    %c0_i32 = arith.constant 0 : i32
    %c0_i32_0 = arith.constant 0 : i32
    %c0_i32_1 = arith.constant 0 : i32
    return %c0_i32, %c0_i32_0 : i32, i32
  }
  func.func @transform_6(%arg0: i32) -> (i32, i32) {
    %c0_i32 = arith.constant 0 : i32
    %c0_i32_0 = arith.constant 0 : i32
    %c0_i32_1 = arith.constant 0 : i32
    return %c0_i32, %c0_i32_0 : i32, i32
  }
  func.func @transform_7(%arg0: i32) -> (i32, i32) {
    %c0_i32 = arith.constant 0 : i32
    %c0_i32_0 = arith.constant 0 : i32
    return %arg0, %c0_i32 : i32, i32
  }
}

</mosaic_0001>

<bundles_post_ra>
// kernel: tpu_custom_call.1
= control target key start
LH: loop header
LB: loop body
LE: loop exit
PB: predicated region body
PF: predicated region fallthrough
CT: control target
= control target key end

     0   :  { %12 = vsyncpa [#allocation3], 0  ;;  %s534_s0 = inlined_call_operand.vmem [shape: f32[8,32], index: 0, kind: input, shape index: {}]   ;;  %s535_s1 = inlined_call_operand.hbm [shape: bf16[32,64], index: 1, kind: input, shape index: {}]   ;;  %s536_s2 = inlined_call_operand.vmem [shape: f32[1,64], index: 2, kind: input, shape index: {}]   ;;  %s537_s3 = inlined_call_operand.vmem [shape: bf16[64,64], index: 3, kind: input, shape index: {}]   ;;  %s538_s4 = inlined_call_operand.vmem [shape: f32[1,64], index: 4, kind: input, shape index: {}]   ;;  %s539_s5 = inlined_call_operand.vmem [shape: bf16[64,8], index: 5, kind: input, shape index: {}]   ;;  %s540_s6 = inlined_call_operand.vmem [shape: f32[1,8], index: 6, kind: input, shape index: {}]   ;;  %s541_s7 = inlined_call_operand.hbm [shape: f32[8,8], index: 7, kind: output, shape index: {}]  }
   0x1   :  { %13 = vsyncpa [#allocation4], 0  ;;  %s426_s24 = smov [#allocation2]   ;;  %s378_s28 = scalar_lea.hbm %s535_s1, 256 }
   0x2   :  { %s21_s25 = sshll.u32 %s426_s24, 4  ;;  %p379_p0 = scmp.ne.s32.totalorder %s535_s1, %s378_s28  ;;  %s22_s25 = int_to_ptr.vmem [resolvable:$true] %s21_s25 }
   0x3   :  { %p382_p1 = scmp.lt.u32.totalorder %s378_s28, %s535_s1 }
   0x5   :  { %p384_p2 = pnand %p382_p1, %p379_p0 }
   0x7   :  { %387 = shalt.err (!%p384_p2)
}
   0x8   :  { %s388_s10 = scalar_lea.vmem %s22_s25, 256  ;;  %p393_p4 = scmp.lt.s32.totalorder %s22_s25, %s22_s25 }
   0x9   :  { %p389_p3 = scmp.ne.s32.totalorder %s22_s25, %s388_s10  ;;  %p394_p5 = scmp.lt.s32.totalorder %s388_s10, %s388_s10 }
   0xb   :  { %p395_p6 = por %p394_p5, %p393_p4 }
   0xd   :  { %p396_p7 = pnand %p395_p6, %p389_p3 }
   0xf   :  { %399 = shalt.err (!%p396_p7)
}
  0x10   :  { %s427_s11 = smov 64   ;;  %s428_s12 = smov 4  }
  0x11   :  { %27 = dma.hbm_to_vmem [thread:$0]  %s535_s1, 256, %s22_s25, [#allocation3], %s427_s11, %s427_s11, %s428_s12  }
  0x12   :  { %422 = dma.done.wait [#allocation3], 256  }
  0x13   :  { %423 = vsyncadd [#allocation3], 4294967040  ;;  %v429_v0 = vmov 0.0   ;;  %vm430_vm0 = vmmov 0   ;;  %v364_v1 = vld [vmem:[#allocation2] sm:$0xff]   ;;  %v365_v2 = vld [vmem:[#allocation2 + $0x8] sm:$0xff]  }
  0x14   :  { %326 = vmatprep.subr.bf16.mxu0 %v429_v0  ;;  %330 = vmatprep.mubr.msk.bf16.mxu0 %vm430_vm0, %v429_v0  ;;  %v42_v3 = vld [vmem:[%s534_s0] sm:$0xff]  ;;  %vm67_vm1 = vcmask 261120   ;;  %v367_v6 = vld [vmem:[%s537_s3 + $0x8] sm:$0xff]   ;;  %v368_v7 = vld [vmem:[%s537_s3 + $0x10] sm:$0xff]   ;;  %vm152_vm2 = vcmask 523264   ;;  %vm280_vm3 = vcmask 64512  }
  0x15   :  { %334 = vmatprep.subr.bf16.mxu1 %v429_v0  ;;  %342 = vmatprep.mubr.msk.bf16.mxu1 %vm430_vm0, %v429_v0  ;;  %v43_v4 = vpack.c.bf16 %v42_v3, %v42_v3  ;;  %v366_v5 = vld [vmem:[%s537_s3] sm:$0xff]   ;;  %v369_v8 = vld [vmem:[%s537_s3 + $0x18] sm:$0xff]   ;;  %v371_v18 = vld [vmem:[%s539_s5 + $0x8] sm:$0xff]  }
  0x16   :  { %327 = vmatpush3.bf16.msra.mxu0 %v364_v1  ;;  %335 = vmatpush3.bf16.msra.mxu1 %v366_v5  ;;  %v297_v9 = vld [vmem:[%s536_s2] ss:$0 sm:$0xff]  ;;  %v372_v19 = vld [vmem:[%s539_s5 + $0x10] sm:$0xff]   ;;  %v373_v20 = vld [vmem:[%s539_s5 + $0x18] sm:$0xff]  }
  0x17   :  { %328 = vmatprep.subr.bf16.mxu0 %v429_v0  ;;  %336 = vmatprep.subr.bf16.mxu1 %v429_v0  ;;  %v370_v17 = vld [vmem:[%s539_s5] sm:$0xff]   ;;  %s431_s5 = smov [#allocation5]  }
  0x18   :  { %v301_v21 = vld [vmem:[%s538_s4] ss:$0 sm:$0xff]  ;;  %s288_s12 = sshll.u32 %s431_s5, 4  ;;  %s289_s12 = int_to_ptr.vmem [resolvable:$true] %s288_s12 }
  0x19   :  { %v307_v29 = vld [vmem:[%s540_s6] ss:$0 sm:$0xff]  ;;  %s400_s4 = scalar_lea.vmem %s289_s12, 128  ;;  %p405_p9 = scmp.lt.s32.totalorder %s289_s12, %s289_s12 }
  0x1a   :  { %329 = vmatpush3.bf16.msra.mxu0 %v365_v2  ;;  %337 = vmatpush3.bf16.msra.mxu1 %v367_v6  ;;  %p401_p8 = scmp.ne.s32.totalorder %s289_s12, %s400_s4  ;;  %p406_p10 = scmp.lt.s32.totalorder %s400_s4, %s400_s4 }
  0x1b   :  { %346 = vmatprep.subr.bf16.mxu0 %v429_v0  ;;  %338 = vmatprep.subr.bf16.mxu1 %v429_v0 }
  0x1c   :  { %p407_p11 = por %p406_p10, %p405_p9 }
  0x1d   :  { %331 = vmatmul.mubr.msk.bf16.vlgmr.msra.gmra.mrb[0].mxu0 %vm67_vm1, %v43_v4 }
  0x1e   :  { %354 = vmatprep.mubr.msk.bf16.mxu0 %vm430_vm0, %v429_v0  ;;  %339 = vmatpush3.bf16.msra.mxu1 %v368_v7  ;;  %p408_p12 = pnand %p407_p11, %p401_p8 }
  0x1f   :  { %340 = vmatprep.subr.bf16.mxu1 %v429_v0  ;;  %347 = vmatpush3.bf16.msra.mxu0 %v370_v17 }
  0x20   :  { %348 = vmatprep.subr.bf16.mxu0 %v429_v0 }
  0x22   :  { %341 = vmatpush3.bf16.msra.mxu1 %v369_v8 }
  0x23   :  { %349 = vmatpush3.bf16.msra.mxu0 %v371_v18 }
  0x24   :  { %350 = vmatprep.subr.bf16.mxu0 %v429_v0 }
  0x27   :  { %351 = vmatpush3.bf16.msra.mxu0 %v372_v19 }
  0x28   :  { %352 = vmatprep.subr.bf16.mxu0 %v429_v0 }
  0x2b   :  { %353 = vmatpush3.bf16.msra.mxu0 %v373_v20 }
  0xf0   :  { %v105_v10 = vpop.f32.mrb[0].mxu0 }
  0xf1   :  { %v106_v11 = vadd.f32 %v297_v9, %v105_v10  ;;  %v332_v12 = vpop.f32.mrb[1].mxu0 }
  0xf2   :  { %v108_v13 = vpop.f32.mrb[2].mxu0 }
  0xf3   :  { %374 = vtanh.f32 %v106_v11  ;;  %v333_v14 = vpop.f32.mrb[3].mxu0 }
  0xfd   :  { %v375_v15 = vpop.eup %374 }
  0xfe   :  { %v112_v16 = vpack.c.bf16 %v375_v15, %v375_v15 }
 0x100   :  { %343 = vmatmul.mubr.msk.bf16.vlgmr.msra.gmra.mrb[0].mxu1 %vm152_vm2, %v112_v16 }
 0x1d3   :  { %v190_v22 = vpop.f32.mrb[0].mxu1 }
 0x1d4   :  { %v191_v23 = vadd.f32 %v301_v21, %v190_v22  ;;  %v344_v24 = vpop.f32.mrb[1].mxu1 }
 0x1d5   :  { %v193_v25 = vpop.f32.mrb[2].mxu1 }
 0x1d6   :  { %376 = vtanh.f32 %v191_v23  ;;  %v345_v26 = vpop.f32.mrb[3].mxu1 }
 0x1e0   :  { %v377_v27 = vpop.eup %376 }
 0x1e1   :  { %v197_v28 = vpack.c.bf16 %v377_v27, %v377_v27 }
 0x1e3   :  { %355 = vmatmul.mubr.msk.bf16.vlgmr.msra.gmra.mrb[4].mxu0 %vm152_vm2, %v197_v28 }
 0x2b6   :  { %v274_v30 = vpop.f32.mrb[4].mxu0 }
 0x2b7   :  { %v275_v31 = vadd.f32 %v307_v29, %v274_v30  ;;  %v356_v32 = vpop.f32.mrb[5].mxu0 }
 0x2b8   :  { %v277_v33 = vpop.f32.mrb[6].mxu0 }
 0x2b9   :  { %v357_v34 = vpop.f32.mrb[7].mxu0  ;;  %281 = vst.msk [vmem:[#allocation5] sm:$0xff] %vm280_vm3, %v275_v31 }
 0x2ba   :  { %411 = shalt.err (!%p408_p12)
}
 0x2bb   :  { %s412_s6 = scalar_lea.hbm %s541_s7, 128 }
 0x2bc   :  { %p413_p13 = scmp.ne.s32.totalorder %s541_s7, %s412_s6  ;;  %p416_p0 = scmp.lt.u32.totalorder %s412_s6, %s541_s7 }
 0x2be   :  { %p418_p1 = pnand %p416_p0, %p413_p13 }
 0x2c0   :  { %421 = shalt.err (!%p418_p1)
}
 0x2c1   :  { %291 = dma.vmem_to_hbm [thread:$0]  %s289_s12, 128, %s541_s7, [#allocation4]  }
 0x2c2   :  { %424 = dma.done.wait [#allocation4], 128  }
 0x2c3   :  { %425 = vsyncadd [#allocation4], 4294967168 }
 0x2c4   :  { %295 = vsyncpa [#allocation3], 1 }
 0x2c5   :  { %296 = vsyncpa [#allocation4], 1 }

</bundles_post_ra>
